<compile_context>
chip_gen: v7x
topology: tpu7x:2x2x1
jax: 0.10.0
libtpu: 0.0.40
codegen_flags: <defaults>
</compile_context>

<pallas_src>
import jax
import jax.numpy as jnp
from jax.experimental import pallas as pl
from jax.experimental.pallas import tpu as pltpu

_LANE = 128      # lane width (last dim granularity)
_SUBLANE = 8     # sublane width (second-to-last dim granularity)
_BATCH_TILE = 128


def _round_up(n, m):
    return ((n + m - 1) // m) * m


def shakespeare_kernel(x_ref, w1_ref, b1_ref, w2_ref, b2_ref, w3_ref, b3_ref,
                       o_ref):
    # Bind grid-resident weight/bias tiles once; reuse w2/b2 for both
    # hidden-layer applications (avoids duplicate VMEM loads / broadcasts).
    x = x_ref[...]
    w1, b1 = w1_ref[...], b1_ref[...]
    w2, b2 = w2_ref[...], b2_ref[...]
    w3, b3 = w3_ref[...], b3_ref[...]

    # Layer 1: Linear(input -> hidden) + Tanh
    h = jnp.tanh(jnp.dot(x, w1, preferred_element_type=jnp.float32) + b1)

    # Layer 2 (shared weights, applied twice): Linear(hidden -> hidden) + Tanh
    h = jnp.tanh(jnp.dot(h, w2, preferred_element_type=jnp.float32) + b2)
    h = jnp.tanh(jnp.dot(h, w2, preferred_element_type=jnp.float32) + b2)

    # Output layer: Linear(hidden -> output), no activation
    o_ref[...] = (jnp.dot(h, w3, preferred_element_type=jnp.float32)
                  + b3).astype(o_ref.dtype)


def shakespeare_forward(x, w1, b1, w2, b2, w3, b3, *, batch_tile=_BATCH_TILE):
    """x: (B, input_dim); weights (in, out); biases (1, out). Returns (B, output_dim)."""
    B, Din = x.shape
    H = w1.shape[1]
    Dout = w3.shape[1]

    # --- Pad to TPU-friendly shapes (zero padding is exact for this MLP). ---
    Din_p = _round_up(Din, _LANE)
    H_p = _round_up(H, _LANE)
    Dout_p = _round_up(Dout, _LANE)
    TB = _round_up(batch_tile, _SUBLANE)
    B_p = _round_up(B, TB)

    def pad2(a, rows, cols):
        return jnp.pad(a, ((0, rows - a.shape[0]), (0, cols - a.shape[1])))

    x_p = pad2(x, B_p, Din_p)
    w1_p, b1_p = pad2(w1, Din_p, H_p), pad2(b1, 1, H_p)
    w2_p, b2_p = pad2(w2, H_p, H_p), pad2(b2, 1, H_p)
    w3_p, b3_p = pad2(w3, H_p, Dout_p), pad2(b3, 1, Dout_p)

    grid = (pl.cdiv(B_p, TB),)

    # Weights / biases: constant index_map -> stay resident across grid steps.
    const = lambda shape: pl.BlockSpec(shape, lambda i: (0, 0))
    # Activations: tiled along the batch axis -> pipelined (double-buffered).
    x_spec = pl.BlockSpec((TB, Din_p), lambda i: (i, 0))
    o_spec = pl.BlockSpec((TB, Dout_p), lambda i: (i, 0))

    # --- Explicit VMEM budget (fits comfortably under v7x's 64 MiB). ---
    elem = jnp.dtype(jnp.float32).itemsize
    vmem_need = elem * (
        2 * TB * Din_p                                   # x tile, double-buffered
        + 2 * TB * Dout_p                                # out tile, double-buffered
        + 2 * TB * H_p                                   # intermediate activations
        + 2 * (Din_p * H_p + H_p * H_p + H_p * Dout_p)   # weights (conservative 2x)
        + 2 * (3 * H_p + Dout_p)                         # biases
    )
    vmem_limit = int(min(max(2 * vmem_need, 4 << 20), 64 << 20))

    out_p = pl.pallas_call(
        shakespeare_kernel,
        out_shape=jax.ShapeDtypeStruct((B_p, Dout_p), jnp.float32),
        grid=grid,
        in_specs=[
            x_spec,
            const((Din_p, H_p)), const((1, H_p)),
            const((H_p, H_p)), const((1, H_p)),
            const((H_p, Dout_p)), const((1, Dout_p)),
        ],
        out_specs=o_spec,
        compiler_params=pltpu.CompilerParams(
            dimension_semantics=("parallel",),   # megacore on v7x
            vmem_limit_bytes=vmem_limit,
        ),
    )(x_p, w1_p, b1_p, w2_p, b2_p, w3_p, b3_p)

    return out_p[:B, :Dout]


def init_linear(key, in_dim, out_dim):
    """Deterministic init mimicking torch.nn.Linear defaults (uniform +/- 1/sqrt(in))."""
    kw, kb = jax.random.split(key)
    bound = 1.0 / jnp.sqrt(jnp.float32(in_dim))
    w = jax.random.uniform(kw, (in_dim, out_dim), jnp.float32, -bound, bound)
    b = jax.random.uniform(kb, (1, out_dim), jnp.float32, -bound, bound)
    return w, b


def _reference(x, w1, b1, w2, b2, w3, b3):
    h = jnp.tanh(x @ w1 + b1)
    h = jnp.tanh(h @ w2 + b2)
    h = jnp.tanh(h @ w2 + b2)
    return h @ w3 + b3


if __name__ == "__main__":
    input_dim, hidden_dim, output_dim = 32, 64, 16

    key = jax.random.PRNGKey(0)
    kx, k1, k2, k3, kx2 = jax.random.split(key, 5)

    w1, b1 = init_linear(k1, input_dim, hidden_dim)
    w2, b2 = init_linear(k2, hidden_dim, hidden_dim)
    w3, b3 = init_linear(k3, hidden_dim, output_dim)

    # Small batch (single grid step, padded).
    x_small = jax.random.normal(kx, (8, input_dim), jnp.float32)
    out_small = jax.block_until_ready(
        shakespeare_forward(x_small, w1, b1, w2, b2, w3, b3))
    ref_small = _reference(x_small, w1, b1, w2, b2, w3, b3)
    assert out_small.shape == (8, output_dim)
    assert jnp.allclose(out_small, ref_small, atol=1e-5, rtol=1e-5)

    # Larger, non-multiple batch (exercises the batch grid + padding path).
    x_big = jax.random.normal(kx2, (300, input_dim), jnp.float32)
    out_big = jax.block_until_ready(
        shakespeare_forward(x_big, w1, b1, w2, b2, w3, b3))
    ref_big = _reference(x_big, w1, b1, w2, b2, w3, b3)
    assert out_big.shape == (300, output_dim)
    assert jnp.allclose(out_big, ref_big, atol=1e-5, rtol=1e-5)

    print("KERNEL_OK")
</pallas_src>

<mosaic_0001>
module attributes {stable_mosaic.version = 11 : i64} {
  func.func @shakespeare_kernel(%arg0: i32, %arg1: memref<128x128xf32, #tpu.memory_space<vmem>>, %arg2: memref<128x128xf32, #tpu.memory_space<vmem>>, %arg3: memref<1x128xf32, #tpu.memory_space<vmem>>, %arg4: memref<128x128xf32, #tpu.memory_space<vmem>>, %arg5: memref<1x128xf32, #tpu.memory_space<vmem>>, %arg6: memref<128x128xf32, #tpu.memory_space<vmem>>, %arg7: memref<1x128xf32, #tpu.memory_space<vmem>>, %arg8: memref<128x128xf32, #tpu.memory_space<vmem>>) attributes {dimension_semantics = [#tpu.dimension_semantics<parallel>], iteration_bounds = array<i64: 1>, scalar_prefetch = 0 : i64, scratch_operands = 0 : i64, tpu.core_type = #tpu.core_type<tc>, window_params = [{transform_indices = @transform_0, window_bounds = array<i64: 128, 128>}, {pipeline_mode = #tpu.pipeline_mode<synchronous>, transform_indices = @transform_1, window_bounds = array<i64: 128, 128>}, {pipeline_mode = #tpu.pipeline_mode<synchronous>, transform_indices = @transform_2, window_bounds = array<i64: 1, 128>}, {pipeline_mode = #tpu.pipeline_mode<synchronous>, transform_indices = @transform_3, window_bounds = array<i64: 128, 128>}, {pipeline_mode = #tpu.pipeline_mode<synchronous>, transform_indices = @transform_4, window_bounds = array<i64: 1, 128>}, {pipeline_mode = #tpu.pipeline_mode<synchronous>, transform_indices = @transform_5, window_bounds = array<i64: 128, 128>}, {pipeline_mode = #tpu.pipeline_mode<synchronous>, transform_indices = @transform_6, window_bounds = array<i64: 1, 128>}, {transform_indices = @transform_7, window_bounds = array<i64: 128, 128>}]} {
    %c0 = arith.constant 0 : index
    %c0_0 = arith.constant 0 : index
    %0 = vector.load %arg1[%c0, %c0_0] : memref<128x128xf32, #tpu.memory_space<vmem>>, vector<128x128xf32>
    %c0_1 = arith.constant 0 : index
    %c0_2 = arith.constant 0 : index
    %1 = vector.load %arg2[%c0_1, %c0_2] : memref<128x128xf32, #tpu.memory_space<vmem>>, vector<128x128xf32>
    %c0_3 = arith.constant 0 : index
    %c0_4 = arith.constant 0 : index
    %2 = vector.load %arg3[%c0_3, %c0_4] : memref<1x128xf32, #tpu.memory_space<vmem>>, vector<1x128xf32>
    %c0_5 = arith.constant 0 : index
    %c0_6 = arith.constant 0 : index
    %3 = vector.load %arg4[%c0_5, %c0_6] : memref<128x128xf32, #tpu.memory_space<vmem>>, vector<128x128xf32>
    %c0_7 = arith.constant 0 : index
    %c0_8 = arith.constant 0 : index
    %4 = vector.load %arg5[%c0_7, %c0_8] : memref<1x128xf32, #tpu.memory_space<vmem>>, vector<1x128xf32>
    %c0_9 = arith.constant 0 : index
    %c0_10 = arith.constant 0 : index
    %5 = vector.load %arg6[%c0_9, %c0_10] : memref<128x128xf32, #tpu.memory_space<vmem>>, vector<128x128xf32>
    %c0_11 = arith.constant 0 : index
    %c0_12 = arith.constant 0 : index
    %6 = vector.load %arg7[%c0_11, %c0_12] : memref<1x128xf32, #tpu.memory_space<vmem>>, vector<1x128xf32>
    %cst = arith.constant dense<0.000000e+00> : vector<128x128xf32>
    %7 = tpu.matmul %0, %1, %cst {dimension_numbers = #tpu.dot_dimension_numbers<[1], [0], [0], [1], [0, 0, 1, 1], [], []>} : vector<128x128xf32>, vector<128x128xf32>, vector<128x128xf32> -> vector<128x128xf32>
    %8 = vector.broadcast %2 : vector<1x128xf32> to vector<128x128xf32>
    %9 = arith.addf %7, %8 : vector<128x128xf32>
    %10 = math.tanh %9 : vector<128x128xf32>
    %cst_13 = arith.constant dense<0.000000e+00> : vector<128x128xf32>
    %11 = tpu.matmul %10, %3, %cst_13 {dimension_numbers = #tpu.dot_dimension_numbers<[1], [0], [0], [1], [0, 0, 1, 1], [], []>} : vector<128x128xf32>, vector<128x128xf32>, vector<128x128xf32> -> vector<128x128xf32>
    %12 = vector.broadcast %4 : vector<1x128xf32> to vector<128x128xf32>
    %13 = arith.addf %11, %12 : vector<128x128xf32>
    %14 = math.tanh %13 : vector<128x128xf32>
    %cst_14 = arith.constant dense<0.000000e+00> : vector<128x128xf32>
    %15 = tpu.matmul %14, %3, %cst_14 {dimension_numbers = #tpu.dot_dimension_numbers<[1], [0], [0], [1], [0, 0, 1, 1], [], []>} : vector<128x128xf32>, vector<128x128xf32>, vector<128x128xf32> -> vector<128x128xf32>
    %16 = vector.broadcast %4 : vector<1x128xf32> to vector<128x128xf32>
    %17 = arith.addf %15, %16 : vector<128x128xf32>
    %18 = math.tanh %17 : vector<128x128xf32>
    %cst_15 = arith.constant dense<0.000000e+00> : vector<128x128xf32>
    %19 = tpu.matmul %18, %5, %cst_15 {dimension_numbers = #tpu.dot_dimension_numbers<[1], [0], [0], [1], [0, 0, 1, 1], [], []>} : vector<128x128xf32>, vector<128x128xf32>, vector<128x128xf32> -> vector<128x128xf32>
    %20 = vector.broadcast %6 : vector<1x128xf32> to vector<128x128xf32>
    %21 = arith.addf %19, %20 : vector<128x128xf32>
    %c0_16 = arith.constant 0 : index
    %c0_17 = arith.constant 0 : index
    %22 = vector.load %arg8[%c0_16, %c0_17] : memref<128x128xf32, #tpu.memory_space<vmem>>, vector<128x128xf32>
    tpu.vector_store %arg8[%c0_16, %c0_17], %21 {strides = array<i32>} : memref<128x128xf32, #tpu.memory_space<vmem>>, vector<128x128xf32>,
    return
  }
  func.func @transform_0(%arg0: i32) -> (i32, i32) {
    %c0_i32 = arith.constant 0 : i32
    %c0_i32_0 = arith.constant 0 : i32
    return %arg0, %c0_i32 : i32, i32
  }
  func.func @transform_1(%arg0: i32) -> (i32, i32) {
    %c0_i32 = arith.constant 0 : i32
    %c0_i32_0 = arith.constant 0 : i32
    %c0_i32_1 = arith.constant 0 : i32
    return %c0_i32, %c0_i32_0 : i32, i32
  }
  func.func @transform_2(%arg0: i32) -> (i32, i32) {
    %c0_i32 = arith.constant 0 : i32
    %c0_i32_0 = arith.constant 0 : i32
    %c0_i32_1 = arith.constant 0 : i32
    return %c0_i32, %c0_i32_0 : i32, i32
  }
  func.func @transform_3(%arg0: i32) -> (i32, i32) {
    %c0_i32 = arith.constant 0 : i32
    %c0_i32_0 = arith.constant 0 : i32
    %c0_i32_1 = arith.constant 0 : i32
    return %c0_i32, %c0_i32_0 : i32, i32
  }
  func.func @transform_4(%arg0: i32) -> (i32, i32) {
    %c0_i32 = arith.constant 0 : i32
    %c0_i32_0 = arith.constant 0 : i32
    %c0_i32_1 = arith.constant 0 : i32
    return %c0_i32, %c0_i32_0 : i32, i32
  }
  func.func @transform_5(%arg0: i32) -> (i32, i32) {
    %c0_i32 = arith.constant 0 : i32
    %c0_i32_0 = arith.constant 0 : i32
    %c0_i32_1 = arith.constant 0 : i32
    return %c0_i32, %c0_i32_0 : i32, i32
  }
  func.func @transform_6(%arg0: i32) -> (i32, i32) {
    %c0_i32 = arith.constant 0 : i32
    %c0_i32_0 = arith.constant 0 : i32
    %c0_i32_1 = arith.constant 0 : i32
    return %c0_i32, %c0_i32_0 : i32, i32
  }
  func.func @transform_7(%arg0: i32) -> (i32, i32) {
    %c0_i32 = arith.constant 0 : i32
    %c0_i32_0 = arith.constant 0 : i32
    return %arg0, %c0_i32 : i32, i32
  }
}

</mosaic_0001>

<bundles_post_ra>
// kernel: tpu_custom_call.1
= control target key start
LH: loop header
LB: loop body
LE: loop exit
PB: predicated region body
PF: predicated region fallthrough
CT: control target
= control target key end

     0   :  { %12 = vsyncpa [#allocation3], 0  ;;  %s1731_s0 = inlined_call_operand.hbm [shape: f32[128,128], index: 0, kind: input, shape index: {}]   ;;  %s1732_s1 = inlined_call_operand.hbm [shape: f32[128,128], index: 1, kind: input, shape index: {}]   ;;  %s1733_s2 = inlined_call_operand.vmem [shape: f32[1,128], index: 2, kind: input, shape index: {}]   ;;  %s1734_s3 = inlined_call_operand.hbm [shape: f32[128,128], index: 3, kind: input, shape index: {}]   ;;  %s1735_s4 = inlined_call_operand.vmem [shape: f32[1,128], index: 4, kind: input, shape index: {}]   ;;  %s1736_s5 = inlined_call_operand.hbm [shape: f32[128,128], index: 5, kind: input, shape index: {}]   ;;  %s1737_s6 = inlined_call_operand.vmem [shape: f32[1,128], index: 6, kind: input, shape index: {}]   ;;  %s1738_s7 = inlined_call_operand.hbm [shape: f32[128,128], index: 7, kind: output, shape index: {}]  }
   0x1   :  { %13 = vsyncpa [#allocation6], 0 }
   0x2   :  { %14 = vsyncpa [#allocation9], 0 }
   0x3   :  { %15 = vsyncpa [#allocation4], 0  ;;  %s1534_s24 = smov [#allocation5]   ;;  %s1535_s26 = smov [#allocation2]  }
   0x4   :  { %s33_s25 = sshll.u32 %s1534_s24, 4  ;;  %s21_s27 = sshll.u32 %s1535_s26, 4  ;;  %s34_s25 = int_to_ptr.vmem [resolvable:$true] %s33_s25  ;;  %s1581_s27 = int_to_ptr.vmem [resolvable:$true] %s21_s27 }
   0x5   :  { %s1416_s30 = scalar_lea.hbm %s1732_s1, 2048 }
   0x6   :  { %p1417_p0 = scmp.ne.s32.totalorder %s1732_s1, %s1416_s30  ;;  %p1420_p1 = scmp.lt.u32.totalorder %s1416_s30, %s1732_s1 }
   0x8   :  { %p1422_p2 = pnand %p1420_p1, %p1417_p0 }
   0xa   :  { %1425 = shalt.err (!%p1422_p2)
}
   0xb   :  { %s1426_s12 = scalar_lea.vmem %s34_s25, 2048  ;;  %p1431_p4 = scmp.lt.s32.totalorder %s34_s25, %s34_s25 }
   0xc   :  { %p1427_p3 = scmp.ne.s32.totalorder %s34_s25, %s1426_s12  ;;  %p1432_p5 = scmp.lt.s32.totalorder %s1426_s12, %s1426_s12 }
   0xe   :  { %p1433_p6 = por %p1432_p5, %p1431_p4 }
  0x10   :  { %p1434_p7 = pnand %p1433_p6, %p1427_p3 }
  0x12   :  { %1437 = shalt.err (!%p1434_p7)
}
  0x13   :  { %s1536_s13 = smov 128   ;;  %s1537_s14 = smov 8  }
  0x14   :  { %39 = dma.hbm_to_vmem [thread:$0]  %s1732_s1, 2048, %s34_s25, [#allocation6], %s1536_s13, %s1536_s13, %s1537_s14  }
  0x15   :  { %s1438_s19 = scalar_lea.hbm %s1731_s0, 2048 }
  0x16   :  { %p1439_p8 = scmp.ne.s32.totalorder %s1731_s0, %s1438_s19  ;;  %p1442_p9 = scmp.lt.u32.totalorder %s1438_s19, %s1731_s0 }
  0x18   :  { %p1444_p10 = pnand %p1442_p9, %p1439_p8 }
  0x1a   :  { %1447 = shalt.err (!%p1444_p10)
}
  0x1b   :  { %s1448_s24 = scalar_lea.vmem %s1581_s27, 2048  ;;  %p1453_p12 = scmp.lt.s32.totalorder %s1581_s27, %s1581_s27 }
  0x1c   :  { %p1449_p11 = scmp.ne.s32.totalorder %s1581_s27, %s1448_s24  ;;  %p1454_p13 = scmp.lt.s32.totalorder %s1448_s24, %s1448_s24 }
  0x1e   :  { %p1455_p0 = por %p1454_p13, %p1453_p12 }
  0x20   :  { %p1456_p1 = pnand %p1455_p0, %p1449_p11 }
  0x22   :  { %1459 = shalt.err (!%p1456_p1)
}
  0x23   :  { %27 = dma.hbm_to_vmem [thread:$0]  %s1731_s0, 2048, %s1581_s27, [#allocation3], %s1536_s13, %s1536_s13, %s1537_s14  }
  0x24   :  { %s1538_s26 = smov [#allocation7]   ;;  %s1539_s29 = smov [#allocation8]  }
  0x25   :  { %s47_s28 = sshll.u32 %s1538_s26, 4  ;;  %s61_s30 = sshll.u32 %s1539_s29, 4  ;;  %s48_s28 = int_to_ptr.vmem [resolvable:$true] %s47_s28  ;;  %s1618_s30 = int_to_ptr.vmem [resolvable:$true] %s61_s30 }
  0x26   :  { %s1460_s10 = scalar_lea.hbm %s1734_s3, 2048 }
  0x27   :  { %p1461_p2 = scmp.ne.s32.totalorder %s1734_s3, %s1460_s10  ;;  %p1464_p3 = scmp.lt.u32.totalorder %s1460_s10, %s1734_s3 }
  0x29   :  { %p1466_p4 = pnand %p1464_p3, %p1461_p2 }
  0x2b   :  { %1469 = shalt.err (!%p1466_p4)
}
  0x2c   :  { %s1470_s0 = scalar_lea.vmem %s48_s28, 2048  ;;  %p1475_p6 = scmp.lt.s32.totalorder %s48_s28, %s48_s28 }
  0x2d   :  { %p1471_p5 = scmp.ne.s32.totalorder %s48_s28, %s1470_s0  ;;  %p1476_p7 = scmp.lt.s32.totalorder %s1470_s0, %s1470_s0 }
  0x2f   :  { %p1477_p8 = por %p1476_p7, %p1475_p6 }
  0x31   :  { %p1478_p9 = pnand %p1477_p8, %p1471_p5 }
  0x33   :  { %1481 = shalt.err (!%p1478_p9)
}
  0x34   :  { %53 = dma.hbm_to_vmem [thread:$0]  %s1734_s3, 2048, %s48_s28, [#allocation6], %s1536_s13, %s1536_s13, %s1537_s14  }
  0x35   :  { %s1482_s20 = scalar_lea.hbm %s1736_s5, 2048 }
  0x36   :  { %p1483_p10 = scmp.ne.s32.totalorder %s1736_s5, %s1482_s20  ;;  %p1486_p11 = scmp.lt.u32.totalorder %s1482_s20, %s1736_s5 }
  0x38   :  { %p1488_p12 = pnand %p1486_p11, %p1483_p10 }
  0x3a   :  { %1491 = shalt.err (!%p1488_p12)
}
  0x3b   :  { %s1492_s1 = scalar_lea.vmem %s1618_s30, 2048  ;;  %p1497_p0 = scmp.lt.s32.totalorder %s1618_s30, %s1618_s30 }
  0x3c   :  { %p1493_p13 = scmp.ne.s32.totalorder %s1618_s30, %s1492_s1  ;;  %p1498_p1 = scmp.lt.s32.totalorder %s1492_s1, %s1492_s1 }
  0x3e   :  { %p1499_p2 = por %p1498_p1, %p1497_p0 }
  0x40   :  { %p1500_p3 = pnand %p1499_p2, %p1493_p13 }
  0x42   :  { %1503 = shalt.err (!%p1500_p3)
}
  0x43   :  { %67 = dma.hbm_to_vmem [thread:$0]  %s1736_s5, 2048, %s1618_s30, [#allocation9], %s1536_s13, %s1536_s13, %s1537_s14  }
  0x44   :  { %1526 = dma.done.wait [#allocation3], 2048  }
  0x45   :  { %1527 = vsyncadd [#allocation3], 4294965248 }
  0x46   :  { %1528 = dma.done.wait [#allocation6], 4096  }
  0x47   :  { %1529 = vsyncadd [#allocation6], 4294963200 }
  0x48   :  { %1530 = dma.done.wait [#allocation9], 2048  }
  0x49   :  { %1531 = vsyncadd [#allocation9], 4294965248  ;;  %v98_v0 = vld [vmem:[#allocation5] sm:$0xff]  ;;  %v99_v1 = vld [vmem:[#allocation5 + $0x8] sm:$0xff] }
  0x4a   :  { %v100_v2 = vld [vmem:[#allocation5 + $0x10] sm:$0xff]  ;;  %v1185_v3 = vpack.c.bf16 %v99_v1, %v98_v0  ;;  %v101_v4 = vld [vmem:[#allocation5 + $0x18] sm:$0xff]  ;;  %v102_v6 = vld [vmem:[#allocation5 + $0x20] sm:$0xff] }
  0x4b   :  { %v1189_v5 = vpack.c.bf16 %v101_v4, %v100_v2  ;;  %v103_v7 = vld [vmem:[#allocation5 + $0x28] sm:$0xff]  ;;  %v82_v9 = vld [vmem:[#allocation2] sm:$0xff]  ;;  %v104_v10 = vld [vmem:[#allocation5 + $0x30] sm:$0xff] }
  0x4c   :  { %1186 = vmatprep.subr.bf16.mxu0 %v1185_v3  ;;  %v1193_v8 = vpack.c.bf16 %v103_v7, %v102_v6  ;;  %v105_v11 = vld [vmem:[#allocation5 + $0x38] sm:$0xff]  ;;  %993 = vmatprep.mubr.f32.mxu0 %v82_v9  ;;  %v106_v13 = vld [vmem:[#allocation5 + $0x40] sm:$0xff]  ;;  %v107_v14 = vld [vmem:[#allocation5 + $0x48] sm:$0xff] }
  0x4d   :  { %1188 = vmatpush3.bf16.msra.mxu0 %v1185_v3  ;;  %v1197_v12 = vpack.c.bf16 %v105_v11, %v104_v10  ;;  %v115_v15 = vld [vmem:[#allocation7] sm:$0xff]  ;;  %v116_v16 = vld [vmem:[#allocation7 + $0x8] sm:$0xff]  ;;  %v117_v17 = vld [vmem:[#allocation7 + $0x10] sm:$0xff]  ;;  %v1201_v21 = vpack.c.bf16 %v107_v14, %v106_v13 }
  0x4e   :  { %1190 = vmatprep.subr.bf16.mxu0 %v1189_v5  ;;  %v118_v18 = vld [vmem:[#allocation7 + $0x18] sm:$0xff]  ;;  %v1217_v19 = vpack.c.bf16 %v116_v16, %v115_v15  ;;  %v119_v22 = vld [vmem:[#allocation7 + $0x20] sm:$0xff]  ;;  %v120_v23 = vld [vmem:[#allocation7 + $0x28] sm:$0xff] }
  0x4f   :  { %v1221_v20 = vpack.c.bf16 %v118_v18, %v117_v17  ;;  %v108_v24 = vld [vmem:[#allocation5 + $0x50] sm:$0xff]  ;;  %v109_v25 = vld [vmem:[#allocation5 + $0x58] sm:$0xff]  ;;  %v1225_v26 = vpack.c.bf16 %v120_v23, %v119_v22  ;;  %v110_v30 = vld [vmem:[#allocation5 + $0x60] sm:$0xff] }
  0x50   :  { %1218 = vmatprep.subr.bf16.mxu1 %v1217_v19  ;;  %v1205_v27 = vpack.c.bf16 %v109_v25, %v108_v24  ;;  %v121_v28 = vld [vmem:[#allocation7 + $0x30] sm:$0xff]  ;;  %v122_v29 = vld [vmem:[#allocation7 + $0x38] sm:$0xff]  ;;  %v111_v31 = vld [vmem:[#allocation5 + $0x68] sm:$0xff] }
  0x51   :  { %1192 = vmatpush3.bf16.msra.mxu0 %v1189_v5  ;;  %1220 = vmatpush3.bf16.msra.mxu1 %v1217_v19  ;;  %v1229_v32 = vpack.c.bf16 %v122_v29, %v121_v28  ;;  %v1209_v33 = vpack.c.bf16 %v111_v31, %v110_v30  ;;  %v112_v34 = vld [vmem:[#allocation5 + $0x70] sm:$0xff]  ;;  %v113_v35 = vld [vmem:[#allocation5 + $0x78] sm:$0xff]  ;;  %v83_v37 = vld [vmem:[#allocation2 + $0x8] sm:$0xff] }
  0x52   :  { %1194 = vmatprep.subr.bf16.mxu0 %v1193_v8  ;;  %1222 = vmatprep.subr.bf16.mxu1 %v1221_v20  ;;  %v1213_v36 = vpack.c.bf16 %v113_v35, %v112_v34  ;;  %v84_v38 = vld [vmem:[#allocation2 + $0x10] sm:$0xff]  ;;  %v85_v39 = vld [vmem:[#allocation2 + $0x18] sm:$0xff]  ;;  %v86_v40 = vld [vmem:[#allocation2 + $0x20] sm:$0xff] }
  0x53   :  { %v87_v41 = vld [vmem:[#allocation2 + $0x28] sm:$0xff]  ;;  %v88_v42 = vld [vmem:[#allocation2 + $0x30] sm:$0xff]  ;;  %v89_v43 = vld [vmem:[#allocation2 + $0x38] sm:$0xff] }
  0x54   :  { %v90_v44 = vld [vmem:[#allocation2 + $0x40] sm:$0xff]  ;;  %v91_v45 = vld [vmem:[#allocation2 + $0x48] sm:$0xff]  ;;  %v92_v46 = vld [vmem:[#allocation2 + $0x50] sm:$0xff] }
  0x55   :  { %1196 = vmatpush3.bf16.msra.mxu0 %v1193_v8  ;;  %1224 = vmatpush3.bf16.msra.mxu1 %v1221_v20  ;;  %v93_v47 = vld [vmem:[#allocation2 + $0x58] sm:$0xff]  ;;  %v94_v48 = vld [vmem:[#allocation2 + $0x60] sm:$0xff]  ;;  %v95_v49 = vld [vmem:[#allocation2 + $0x68] sm:$0xff] }
  0x56   :  { %1198 = vmatprep.subr.bf16.mxu0 %v1197_v12  ;;  %1226 = vmatprep.subr.bf16.mxu1 %v1225_v26  ;;  %v96_v50 = vld [vmem:[#allocation2 + $0x70] sm:$0xff]  ;;  %v97_v51 = vld [vmem:[#allocation2 + $0x78] sm:$0xff]  ;;  %v123_v52 = vld [vmem:[#allocation7 + $0x40] sm:$0xff] }
  0x57   :  { %v124_v53 = vld [vmem:[#allocation7 + $0x48] sm:$0xff]  ;;  %v125_v55 = vld [vmem:[#allocation7 + $0x50] sm:$0xff]  ;;  %v126_v56 = vld [vmem:[#allocation7 + $0x58] sm:$0xff] }
  0x58   :  { %v1233_v54 = vpack.c.bf16 %v124_v53, %v123_v52  ;;  %v1237_v57 = vpack.c.bf16 %v126_v56, %v125_v55  ;;  %v127_v58 = vld [vmem:[#allocation7 + $0x60] sm:$0xff]  ;;  %v128_v59 = vld [vmem:[#allocation7 + $0x68] sm:$0xff]  ;;  %v129_v61 = vld [vmem:[#allocation7 + $0x70] sm:$0xff] }
  0x59   :  { %1200 = vmatpush3.bf16.msra.mxu0 %v1197_v12  ;;  %1228 = vmatpush3.bf16.msra.mxu1 %v1225_v26  ;;  %v1241_v60 = vpack.c.bf16 %v128_v59, %v127_v58  ;;  %v130_v62 = vld [vmem:[#allocation7 + $0x78] sm:$0xff]  ;;  %v1658_v0 = vld [vmem:[%s1733_s2] ss:$0 sm:$0xff]  ;;  %v137_v56 = vld [vmem:[#allocation8 + $0x28] sm:$0xff] }
  0x5a   :  { %1202 = vmatprep.subr.bf16.mxu0 %v1201_v21  ;;  %1230 = vmatprep.subr.bf16.mxu1 %v1229_v32  ;;  %v1245_v63 = vpack.c.bf16 %v130_v62, %v129_v61  ;;  %v135_v53 = vld [vmem:[#allocation8 + $0x18] sm:$0xff]  ;;  %v136_v55 = vld [vmem:[#allocation8 + $0x20] sm:$0xff]  ;;  %v138_v58 = vld [vmem:[#allocation8 + $0x30] sm:$0xff] }
  0x5b   :  { %v139_v59 = vld [vmem:[#allocation8 + $0x38] sm:$0xff]  ;;  %v140_v61 = vld [vmem:[#allocation8 + $0x40] sm:$0xff]  ;;  %v141_v62 = vld [vmem:[#allocation8 + $0x48] sm:$0xff] }
  0x5d   :  { %1204 = vmatpush3.bf16.msra.mxu0 %v1201_v21  ;;  %1232 = vmatpush3.bf16.msra.mxu1 %v1229_v32 }
  0x5e   :  { %1206 = vmatprep.subr.bf16.mxu0 %v1205_v27  ;;  %1234 = vmatprep.subr.bf16.mxu1 %v1233_v54 }
  0x61   :  { %1208 = vmatpush3.bf16.msra.mxu0 %v1205_v27  ;;  %1236 = vmatpush3.bf16.msra.mxu1 %v1233_v54 }
  0x62   :  { %1210 = vmatprep.subr.bf16.mxu0 %v1209_v33  ;;  %1238 = vmatprep.subr.bf16.mxu1 %v1237_v57 }
  0x65   :  { %1212 = vmatpush3.bf16.msra.mxu0 %v1209_v33  ;;  %1240 = vmatpush3.bf16.msra.mxu1 %v1237_v57 }
  0x66   :  { %1214 = vmatprep.subr.bf16.mxu0 %v1213_v36  ;;  %1242 = vmatprep.subr.bf16.mxu1 %v1241_v60 }
  0x69   :  { %1216 = vmatpush3.bf16.msra.mxu0 %v1213_v36  ;;  %1244 = vmatpush3.bf16.msra.mxu1 %v1241_v60 }
  0x6a   :  { %1250 = vmatprep.subr.bf16.mxu0 %v1217_v19  ;;  %1246 = vmatprep.subr.bf16.mxu1 %v1245_v63 }
  0x6c   :  { %994 = vmatmul.mubr.f32.vlgmr.msra.gmra.mrb[0].mxu0 %v83_v37 }
  0x6d   :  { %996 = vmatprep.mubr.f32.mxu0 %v84_v38  ;;  %1252 = vmatpush3.bf16.msra.mxu0 %v1217_v19 }
  0x6e   :  { %1254 = vmatprep.subr.bf16.mxu0 %v1221_v20  ;;  %1248 = vmatpush3.bf16.msra.mxu1 %v1245_v63 }
  0x70   :  { %997 = vmatmul.mubr.f32.gmra.mrb[2].mxu0 %v85_v39 }
  0x71   :  { %999 = vmatprep.mubr.f32.mxu0 %v86_v40  ;;  %1256 = vmatpush3.bf16.msra.mxu0 %v1221_v20 }
  0x72   :  { %1258 = vmatprep.subr.bf16.mxu0 %v1225_v26 }
  0x74   :  { %1000 = vmatmul.mubr.f32.gmra.mrb[4].mxu0 %v87_v41 }
  0x75   :  { %1002 = vmatprep.mubr.f32.mxu0 %v88_v42  ;;  %1260 = vmatpush3.bf16.msra.mxu0 %v1225_v26 }
  0x76   :  { %1262 = vmatprep.subr.bf16.mxu0 %v1229_v32 }
  0x78   :  { %1003 = vmatmul.mubr.f32.gmra.mrb[6].mxu0 %v89_v43 }
  0x79   :  { %1005 = vmatprep.mubr.f32.mxu0 %v90_v44  ;;  %1264 = vmatpush3.bf16.msra.mxu0 %v1229_v32 }
  0x7a   :  { %1266 = vmatprep.subr.bf16.mxu0 %v1233_v54 }
  0x7c   :  { %1006 = vmatmul.mubr.f32.gmra.mrb[8].mxu0 %v91_v45 }
  0x7d   :  { %1008 = vmatprep.mubr.f32.mxu0 %v92_v46  ;;  %1268 = vmatpush3.bf16.msra.mxu0 %v1233_v54 }
  0x7e   :  { %1270 = vmatprep.subr.bf16.mxu0 %v1237_v57 }
  0x80   :  { %1009 = vmatmul.mubr.f32.gmra.mrb[10].mxu0 %v93_v47 }
  0x81   :  { %1011 = vmatprep.mubr.f32.mxu0 %v94_v48  ;;  %1272 = vmatpush3.bf16.msra.mxu0 %v1237_v57  ;;  %v1289_v57 = vpack.c.bf16 %v137_v56, %v136_v55  ;;  %v146_v55 = vld [vmem:[#allocation8 + $0x70] sm:$0xff]  ;;  %v147_v56 = vld [vmem:[#allocation8 + $0x78] sm:$0xff] }
  0x82   :  { %1274 = vmatprep.subr.bf16.mxu0 %v1241_v60 }
  0x84   :  { %1012 = vmatmul.mubr.f32.gmra.mrb[12].mxu0 %v95_v49  ;;  %v132_v49 = vld [vmem:[#allocation8] sm:$0xff] }
  0x85   :  { %1014 = vmatprep.mubr.f32.mxu0 %v96_v50  ;;  %1276 = vmatpush3.bf16.msra.mxu0 %v1241_v60  ;;  %v133_v50 = vld [vmem:[#allocation8 + $0x8] sm:$0xff]  ;;  %v1293_v60 = vpack.c.bf16 %v139_v59, %v138_v58 }
  0x86   :  { %1278 = vmatprep.subr.bf16.mxu0 %v1245_v63  ;;  %v1281_v52 = vpack.c.bf16 %v133_v50, %v132_v49  ;;  %v142_v49 = vld [vmem:[#allocation8 + $0x50] sm:$0xff]  ;;  %v143_v50 = vld [vmem:[#allocation8 + $0x58] sm:$0xff] }
  0x88   :  { %1015 = vmatmul.mubr.f32.gmra.mrb[14].mxu0 %v97_v51  ;;  %v134_v51 = vld [vmem:[#allocation8 + $0x10] sm:$0xff]  ;;  %1282 = vmatprep.subr.bf16.mxu1 %v1281_v52 }
  0x89   :  { %1280 = vmatpush3.bf16.msra.mxu0 %v1245_v63  ;;  %v1285_v54 = vpack.c.bf16 %v135_v53, %v134_v51  ;;  %v1297_v63 = vpack.c.bf16 %v141_v62, %v140_v61  ;;  %v1301_v51 = vpack.c.bf16 %v143_v50, %v142_v49  ;;  %v145_v53 = vld [vmem:[#allocation8 + $0x68] sm:$0xff] }
 0x13f   :  { %v995_v1 = vpop.f32.mrb[0].mxu0 }
 0x140   :  { %v227_v2 = vadd.f32 %v995_v1, %v1658_v0  ;;  %v221_v3 = vpop.f32.mrb[1].mxu0 }
 0x141   :  { %v222_v4 = vadd.f32 %v1658_v0, %v221_v3 }
 0x143   :  { %1320 = vtanh.f32 %v222_v4  ;;  %v998_v5 = vpop.f32.mrb[2].mxu0 }
 0x144   :  { %1322 = vtanh.f32 %v227_v2  ;;  %v237_v6 = vadd.f32 %v998_v5, %v1658_v0  ;;  %v231_v7 = vpop.f32.mrb[3].mxu0 }
 0x145   :  { %v232_v8 = vadd.f32 %v1658_v0, %v231_v7 }
 0x147   :  { %1324 = vtanh.f32 %v232_v8  ;;  %v1001_v9 = vpop.f32.mrb[4].mxu0 }
 0x148   :  { %1326 = vtanh.f32 %v237_v6  ;;  %v247_v10 = vadd.f32 %v1001_v9, %v1658_v0  ;;  %v241_v11 = vpop.f32.mrb[5].mxu0 }
 0x149   :  { %v242_v12 = vadd.f32 %v1658_v0, %v241_v11 }
 0x14b   :  { %1328 = vtanh.f32 %v242_v12  ;;  %v1004_v13 = vpop.f32.mrb[6].mxu0 }
 0x14c   :  { %1330 = vtanh.f32 %v247_v10  ;;  %v257_v14 = vadd.f32 %v1004_v13, %v1658_v0  ;;  %v251_v15 = vpop.f32.mrb[7].mxu0 }
 0x14d   :  { %v1321_v16 = vpop.eup %1320  ;;  %v252_v17 = vadd.f32 %v1658_v0, %v251_v15 }
 0x14e   :  { %v1323_v18 = vpop.eup %1322  ;;  %1049 = vmatprep.mubr.f32.mxu1 %v1321_v16 }
 0x14f   :  { %1332 = vtanh.f32 %v252_v17  ;;  %v1007_v19 = vpop.f32.mrb[8].mxu0  ;;  %1050 = vmatmul.mubr.f32.vlgmr.msra.gmra.mrb[0].mxu1 %v1323_v18 }
 0x150   :  { %1334 = vtanh.f32 %v257_v14  ;;  %v267_v20 = vadd.f32 %v1007_v19, %v1658_v0  ;;  %v261_v21 = vpop.f32.mrb[9].mxu0  ;;  %1284 = vmatpush3.bf16.msra.mxu1 %v1281_v52  ;;  %v144_v52 = vld [vmem:[#allocation8 + $0x60] sm:$0xff] }
 0x151   :  { %v1325_v22 = vpop.eup %1324  ;;  %v262_v23 = vadd.f32 %v1658_v0, %v261_v21  ;;  %1286 = vmatprep.subr.bf16.mxu1 %v1285_v54 }
 0x152   :  { %v1327_v24 = vpop.eup %1326  ;;  %1052 = vmatprep.mubr.f32.mxu1 %v1325_v22 }
 0x153   :  { %1336 = vtanh.f32 %v262_v23  ;;  %v1010_v25 = vpop.f32.mrb[10].mxu0  ;;  %1053 = vmatmul.mubr.f32.gmra.mrb[2].mxu1 %v1327_v24 }
 0x154   :  { %1338 = vtanh.f32 %v267_v20  ;;  %v277_v26 = vadd.f32 %v1010_v25, %v1658_v0  ;;  %v271_v27 = vpop.f32.mrb[11].mxu0  ;;  %1288 = vmatpush3.bf16.msra.mxu1 %v1285_v54  ;;  %v1305_v54 = vpack.c.bf16 %v145_v53, %v144_v52 }
 0x155   :  { %v1329_v28 = vpop.eup %1328  ;;  %v272_v29 = vadd.f32 %v1658_v0, %v271_v27  ;;  %1290 = vmatprep.subr.bf16.mxu1 %v1289_v57 }
 0x156   :  { %v1331_v30 = vpop.eup %1330  ;;  %1055 = vmatprep.mubr.f32.mxu1 %v1329_v28 }
 0x157   :  { %1340 = vtanh.f32 %v272_v29  ;;  %v1013_v31 = vpop.f32.mrb[12].mxu0  ;;  %1056 = vmatmul.mubr.f32.gmra.mrb[4].mxu1 %v1331_v30 }
 0x158   :  { %1342 = vtanh.f32 %v277_v26  ;;  %v287_v32 = vadd.f32 %v1013_v31, %v1658_v0  ;;  %v281_v33 = vpop.f32.mrb[13].mxu0  ;;  %1292 = vmatpush3.bf16.msra.mxu1 %v1289_v57  ;;  %v1309_v57 = vpack.c.bf16 %v147_v56, %v146_v55 }
 0x159   :  { %v1333_v34 = vpop.eup %1332  ;;  %v282_v35 = vadd.f32 %v1658_v0, %v281_v33  ;;  %1294 = vmatprep.subr.bf16.mxu1 %v1293_v60 }
 0x15a   :  { %v1335_v36 = vpop.eup %1334  ;;  %1058 = vmatprep.mubr.f32.mxu1 %v1333_v34 }
 0x15b   :  { %1344 = vtanh.f32 %v282_v35  ;;  %v1016_v37 = vpop.f32.mrb[14].mxu0  ;;  %1059 = vmatmul.mubr.f32.gmra.mrb[6].mxu1 %v1335_v36 }
 0x15c   :  { %1346 = vtanh.f32 %v287_v32  ;;  %v297_v38 = vadd.f32 %v1016_v37, %v1658_v0  ;;  %v291_v39 = vpop.f32.mrb[15].mxu0  ;;  %1296 = vmatpush3.bf16.msra.mxu1 %v1293_v60 }
 0x15d   :  { %v1337_v40 = vpop.eup %1336  ;;  %v292_v41 = vadd.f32 %v1658_v0, %v291_v39  ;;  %1298 = vmatprep.subr.bf16.mxu1 %v1297_v63  ;;  %v1679_v0 = vld [vmem:[%s1735_s4] ss:$0 sm:$0xff] }
 0x15e   :  { %v1339_v42 = vpop.eup %1338  ;;  %1061 = vmatprep.mubr.f32.mxu1 %v1337_v40 }
 0x15f   :  { %1348 = vtanh.f32 %v292_v41  ;;  %1062 = vmatmul.mubr.f32.gmra.mrb[8].mxu1 %v1339_v42 }
 0x160   :  { %1350 = vtanh.f32 %v297_v38  ;;  %1300 = vmatpush3.bf16.msra.mxu1 %v1297_v63 }
 0x161   :  { %v1341_v43 = vpop.eup %1340  ;;  %1302 = vmatprep.subr.bf16.mxu1 %v1301_v51 }
 0x162   :  { %v1343_v44 = vpop.eup %1342  ;;  %1064 = vmatprep.mubr.f32.mxu1 %v1341_v43 }
 0x163   :  { %1065 = vmatmul.mubr.f32.gmra.mrb[10].mxu1 %v1343_v44 }
 0x164   :  { %1304 = vmatpush3.bf16.msra.mxu1 %v1301_v51 }
 0x165   :  { %v1345_v45 = vpop.eup %1344  ;;  %1306 = vmatprep.subr.bf16.mxu1 %v1305_v54 }
 0x166   :  { %v1347_v46 = vpop.eup %1346  ;;  %1067 = vmatprep.mubr.f32.mxu1 %v1345_v45 }
 0x167   :  { %1068 = vmatmul.mubr.f32.gmra.mrb[12].mxu1 %v1347_v46 }
 0x168   :  { %1308 = vmatpush3.bf16.msra.mxu1 %v1305_v54 }
 0x169   :  { %v1349_v47 = vpop.eup %1348  ;;  %1310 = vmatprep.subr.bf16.mxu1 %v1309_v57 }
 0x16a   :  { %v1351_v48 = vpop.eup %1350  ;;  %1070 = vmatprep.mubr.f32.mxu1 %v1349_v47 }
 0x16b   :  { %1071 = vmatmul.mubr.f32.gmra.mrb[14].mxu1 %v1351_v48 }
 0x16c   :  { %1312 = vmatpush3.bf16.msra.mxu1 %v1309_v57 }
 0x222   :  { %v1051_v1 = vpop.f32.mrb[0].mxu1 }
 0x223   :  { %v394_v2 = vadd.f32 %v1051_v1, %v1679_v0  ;;  %v388_v3 = vpop.f32.mrb[1].mxu1 }
 0x224   :  { %v389_v4 = vadd.f32 %v1679_v0, %v388_v3 }
 0x226   :  { %1352 = vtanh.f32 %v389_v4  ;;  %v1054_v5 = vpop.f32.mrb[2].mxu1 }
 0x227   :  { %1354 = vtanh.f32 %v394_v2  ;;  %v404_v6 = vadd.f32 %v1054_v5, %v1679_v0  ;;  %v398_v7 = vpop.f32.mrb[3].mxu1 }
 0x228   :  { %v399_v8 = vadd.f32 %v1679_v0, %v398_v7 }
 0x22a   :  { %1356 = vtanh.f32 %v399_v8  ;;  %v1057_v9 = vpop.f32.mrb[4].mxu1 }
 0x22b   :  { %1358 = vtanh.f32 %v404_v6  ;;  %v414_v10 = vadd.f32 %v1057_v9, %v1679_v0  ;;  %v408_v11 = vpop.f32.mrb[5].mxu1 }
 0x22c   :  { %v409_v12 = vadd.f32 %v1679_v0, %v408_v11 }
 0x22e   :  { %1360 = vtanh.f32 %v409_v12  ;;  %v1060_v13 = vpop.f32.mrb[6].mxu1 }
 0x22f   :  { %1362 = vtanh.f32 %v414_v10  ;;  %v424_v14 = vadd.f32 %v1060_v13, %v1679_v0  ;;  %v418_v15 = vpop.f32.mrb[7].mxu1 }
 0x230   :  { %v1353_v16 = vpop.eup %1352  ;;  %v419_v17 = vadd.f32 %v1679_v0, %v418_v15 }
 0x231   :  { %v1355_v18 = vpop.eup %1354  ;;  %1105 = vmatprep.mubr.f32.mxu0 %v1353_v16 }
 0x232   :  { %1364 = vtanh.f32 %v419_v17  ;;  %v1063_v19 = vpop.f32.mrb[8].mxu1  ;;  %1106 = vmatmul.mubr.f32.vlgmr.msra.gmra.mrb[16].mxu0 %v1355_v18 }
 0x233   :  { %1366 = vtanh.f32 %v424_v14  ;;  %v434_v20 = vadd.f32 %v1063_v19, %v1679_v0  ;;  %v428_v21 = vpop.f32.mrb[9].mxu1 }
 0x234   :  { %v1357_v22 = vpop.eup %1356  ;;  %v429_v23 = vadd.f32 %v1679_v0, %v428_v21 }
 0x235   :  { %v1359_v24 = vpop.eup %1358  ;;  %1108 = vmatprep.mubr.f32.mxu0 %v1357_v22 }
 0x236   :  { %1368 = vtanh.f32 %v429_v23  ;;  %v1066_v25 = vpop.f32.mrb[10].mxu1  ;;  %1109 = vmatmul.mubr.f32.gmra.mrb[18].mxu0 %v1359_v24 }
 0x237   :  { %1370 = vtanh.f32 %v434_v20  ;;  %v444_v26 = vadd.f32 %v1066_v25, %v1679_v0  ;;  %v438_v27 = vpop.f32.mrb[11].mxu1 }
 0x238   :  { %v1361_v28 = vpop.eup %1360  ;;  %v439_v29 = vadd.f32 %v1679_v0, %v438_v27 }
 0x239   :  { %v1363_v30 = vpop.eup %1362  ;;  %1111 = vmatprep.mubr.f32.mxu0 %v1361_v28 }
 0x23a   :  { %1372 = vtanh.f32 %v439_v29  ;;  %v1069_v31 = vpop.f32.mrb[12].mxu1  ;;  %1112 = vmatmul.mubr.f32.gmra.mrb[20].mxu0 %v1363_v30 }
 0x23b   :  { %1374 = vtanh.f32 %v444_v26  ;;  %v454_v32 = vadd.f32 %v1069_v31, %v1679_v0  ;;  %v448_v33 = vpop.f32.mrb[13].mxu1 }
 0x23c   :  { %v1365_v34 = vpop.eup %1364  ;;  %v449_v35 = vadd.f32 %v1679_v0, %v448_v33 }
 0x23d   :  { %v1367_v36 = vpop.eup %1366  ;;  %1114 = vmatprep.mubr.f32.mxu0 %v1365_v34 }
 0x23e   :  { %1376 = vtanh.f32 %v449_v35  ;;  %v1072_v37 = vpop.f32.mrb[14].mxu1  ;;  %1115 = vmatmul.mubr.f32.gmra.mrb[22].mxu0 %v1367_v36 }
 0x23f   :  { %1378 = vtanh.f32 %v454_v32  ;;  %v464_v38 = vadd.f32 %v1072_v37, %v1679_v0  ;;  %v458_v39 = vpop.f32.mrb[15].mxu1 }
 0x240   :  { %v1369_v40 = vpop.eup %1368  ;;  %v459_v41 = vadd.f32 %v1679_v0, %v458_v39 }
 0x241   :  { %v1371_v42 = vpop.eup %1370  ;;  %1117 = vmatprep.mubr.f32.mxu0 %v1369_v40 }
 0x242   :  { %1380 = vtanh.f32 %v459_v41  ;;  %1118 = vmatmul.mubr.f32.gmra.mrb[24].mxu0 %v1371_v42 }
 0x243   :  { %1382 = vtanh.f32 %v464_v38 }
 0x244   :  { %v1373_v43 = vpop.eup %1372 }
 0x245   :  { %v1375_v44 = vpop.eup %1374  ;;  %1120 = vmatprep.mubr.f32.mxu0 %v1373_v43 }
 0x246   :  { %1121 = vmatmul.mubr.f32.gmra.mrb[26].mxu0 %v1375_v44 }
 0x248   :  { %v1377_v45 = vpop.eup %1376 }
 0x249   :  { %v1379_v46 = vpop.eup %1378  ;;  %1123 = vmatprep.mubr.f32.mxu0 %v1377_v45 }
 0x24a   :  { %1124 = vmatmul.mubr.f32.gmra.mrb[28].mxu0 %v1379_v46 }
 0x24c   :  { %v1381_v47 = vpop.eup %1380 }
 0x24d   :  { %v1383_v48 = vpop.eup %1382  ;;  %1126 = vmatprep.mubr.f32.mxu0 %v1381_v47 }
 0x24e   :  { %1127 = vmatmul.mubr.f32.gmra.mrb[30].mxu0 %v1383_v48 }
 0x305   :  { %v1107_v58 = vpop.f32.mrb[16].mxu0 }
 0x306   :  { %v555_v59 = vadd.f32 %v1107_v58, %v1679_v0  ;;  %v549_v60 = vpop.f32.mrb[17].mxu0 }
 0x307   :  { %v550_v61 = vadd.f32 %v1679_v0, %v549_v60 }
 0x309   :  { %1384 = vtanh.f32 %v550_v61  ;;  %v1110_v62 = vpop.f32.mrb[18].mxu0 }
 0x30a   :  { %1386 = vtanh.f32 %v555_v59  ;;  %v565_v63 = vadd.f32 %v1110_v62, %v1679_v0  ;;  %v559_v1 = vpop.f32.mrb[19].mxu0 }
 0x30b   :  { %v560_v2 = vadd.f32 %v1679_v0, %v559_v1 }
 0x30d   :  { %1388 = vtanh.f32 %v560_v2  ;;  %v1113_v3 = vpop.f32.mrb[20].mxu0 }
 0x30e   :  { %1390 = vtanh.f32 %v565_v63  ;;  %v575_v4 = vadd.f32 %v1113_v3, %v1679_v0  ;;  %v569_v5 = vpop.f32.mrb[21].mxu0 }
 0x30f   :  { %v570_v6 = vadd.f32 %v1679_v0, %v569_v5 }
 0x311   :  { %1392 = vtanh.f32 %v570_v6  ;;  %v1116_v7 = vpop.f32.mrb[22].mxu0 }
 0x312   :  { %1394 = vtanh.f32 %v575_v4  ;;  %v585_v8 = vadd.f32 %v1116_v7, %v1679_v0  ;;  %v579_v9 = vpop.f32.mrb[23].mxu0 }
 0x313   :  { %v1385_v10 = vpop.eup %1384  ;;  %v580_v11 = vadd.f32 %v1679_v0, %v579_v9 }
 0x314   :  { %v1387_v12 = vpop.eup %1386  ;;  %1161 = vmatprep.mubr.f32.mxu1 %v1385_v10 }
 0x315   :  { %1396 = vtanh.f32 %v580_v11  ;;  %v1119_v13 = vpop.f32.mrb[24].mxu0  ;;  %1162 = vmatmul.mubr.f32.vlgmr.msra.gmra.mrb[16].mxu1 %v1387_v12 }
 0x316   :  { %1398 = vtanh.f32 %v585_v8  ;;  %v595_v14 = vadd.f32 %v1119_v13, %v1679_v0  ;;  %v589_v15 = vpop.f32.mrb[25].mxu0 }
 0x317   :  { %v1389_v16 = vpop.eup %1388  ;;  %v590_v17 = vadd.f32 %v1679_v0, %v589_v15 }
 0x318   :  { %v1391_v18 = vpop.eup %1390  ;;  %1164 = vmatprep.mubr.f32.mxu1 %v1389_v16 }
 0x319   :  { %1400 = vtanh.f32 %v590_v17  ;;  %v1122_v19 = vpop.f32.mrb[26].mxu0  ;;  %1165 = vmatmul.mubr.f32.gmra.mrb[18].mxu1 %v1391_v18 }
 0x31a   :  { %1402 = vtanh.f32 %v595_v14  ;;  %v605_v20 = vadd.f32 %v1122_v19, %v1679_v0  ;;  %v599_v21 = vpop.f32.mrb[27].mxu0 }
 0x31b   :  { %v1393_v22 = vpop.eup %1392  ;;  %v600_v23 = vadd.f32 %v1679_v0, %v599_v21 }
 0x31c   :  { %v1395_v24 = vpop.eup %1394  ;;  %1167 = vmatprep.mubr.f32.mxu1 %v1393_v22 }
 0x31d   :  { %1404 = vtanh.f32 %v600_v23  ;;  %v1125_v25 = vpop.f32.mrb[28].mxu0  ;;  %1168 = vmatmul.mubr.f32.gmra.mrb[20].mxu1 %v1395_v24 }
 0x31e   :  { %1406 = vtanh.f32 %v605_v20  ;;  %v615_v26 = vadd.f32 %v1125_v25, %v1679_v0  ;;  %v609_v27 = vpop.f32.mrb[29].mxu0 }
 0x31f   :  { %v1397_v28 = vpop.eup %1396  ;;  %v610_v29 = vadd.f32 %v1679_v0, %v609_v27 }
 0x320   :  { %v1399_v30 = vpop.eup %1398  ;;  %1170 = vmatprep.mubr.f32.mxu1 %v1397_v28 }
 0x321   :  { %1408 = vtanh.f32 %v610_v29  ;;  %v1128_v31 = vpop.f32.mrb[30].mxu0  ;;  %1171 = vmatmul.mubr.f32.gmra.mrb[22].mxu1 %v1399_v30 }
 0x322   :  { %1410 = vtanh.f32 %v615_v26  ;;  %v625_v32 = vadd.f32 %v1128_v31, %v1679_v0  ;;  %v619_v33 = vpop.f32.mrb[31].mxu0 }
 0x323   :  { %v1401_v34 = vpop.eup %1400  ;;  %v620_v35 = vadd.f32 %v1679_v0, %v619_v33  ;;  %v832_v0 = vld [vmem:[%s1737_s6] ss:$0 sm:$0xff]  ;;  %s1540_s6 = smov [#allocation10]  }
 0x324   :  { %v1403_v36 = vpop.eup %1402  ;;  %1173 = vmatprep.mubr.f32.mxu1 %v1401_v34  ;;  %s816_s30 = sshll.u32 %s1540_s6, 4  ;;  %s817_s30 = int_to_ptr.vmem [resolvable:$true] %s816_s30 }
 0x325   :  { %1412 = vtanh.f32 %v620_v35  ;;  %1174 = vmatmul.mubr.f32.gmra.mrb[24].mxu1 %v1403_v36  ;;  %s1504_s8 = scalar_lea.vmem %s817_s30, 2048  ;;  %p1509_p5 = scmp.lt.s32.totalorder %s817_s30, %s817_s30 }
 0x326   :  { %1414 = vtanh.f32 %v625_v32  ;;  %p1505_p4 = scmp.ne.s32.totalorder %s817_s30, %s1504_s8  ;;  %p1510_p6 = scmp.lt.s32.totalorder %s1504_s8, %s1504_s8 }
 0x327   :  { %v1405_v37 = vpop.eup %1404 }
 0x328   :  { %v1407_v38 = vpop.eup %1406  ;;  %1176 = vmatprep.mubr.f32.mxu1 %v1405_v37  ;;  %p1511_p7 = por %p1510_p6, %p1509_p5 }
 0x329   :  { %1177 = vmatmul.mubr.f32.gmra.mrb[26].mxu1 %v1407_v38 }
 0x32a   :  { %p1512_p8 = pnand %p1511_p7, %p1505_p4 }
 0x32b   :  { %v1409_v39 = vpop.eup %1408 }
 0x32c   :  { %v1411_v40 = vpop.eup %1410  ;;  %1179 = vmatprep.mubr.f32.mxu1 %v1409_v39 }
 0x32d   :  { %1180 = vmatmul.mubr.f32.gmra.mrb[28].mxu1 %v1411_v40 }
 0x32f   :  { %v1413_v41 = vpop.eup %1412 }
 0x330   :  { %v1415_v42 = vpop.eup %1414  ;;  %1182 = vmatprep.mubr.f32.mxu1 %v1413_v41 }
 0x331   :  { %1183 = vmatmul.mubr.f32.gmra.mrb[30].mxu1 %v1415_v42 }
 0x3e8   :  { %v1163_v43 = vpop.f32.mrb[16].mxu1 }
 0x3e9   :  { %v722_v44 = vadd.f32 %v1163_v43, %v832_v0  ;;  %v716_v45 = vpop.f32.mrb[17].mxu1 }
 0x3ea   :  { %v717_v46 = vadd.f32 %v832_v0, %v716_v45 }
 0x3eb   :  { %796 = vst [vmem:[#allocation10 + $0x8] sm:$0xff] %v722_v44 }
 0x3ec   :  { %795 = vst [vmem:[#allocation10] sm:$0xff] %v717_v46  ;;  %v1166_v47 = vpop.f32.mrb[18].mxu1 }
 0x3ed   :  { %v732_v48 = vadd.f32 %v1166_v47, %v832_v0  ;;  %v726_v49 = vpop.f32.mrb[19].mxu1 }
 0x3ee   :  { %v727_v50 = vadd.f32 %v832_v0, %v726_v49 }
 0x3ef   :  { %798 = vst [vmem:[#allocation10 + $0x18] sm:$0xff] %v732_v48 }
 0x3f0   :  { %797 = vst [vmem:[#allocation10 + $0x10] sm:$0xff] %v727_v50  ;;  %v1169_v51 = vpop.f32.mrb[20].mxu1 }
 0x3f1   :  { %v742_v52 = vadd.f32 %v1169_v51, %v832_v0  ;;  %v736_v53 = vpop.f32.mrb[21].mxu1 }
 0x3f2   :  { %v737_v54 = vadd.f32 %v832_v0, %v736_v53 }
 0x3f3   :  { %800 = vst [vmem:[#allocation10 + $0x28] sm:$0xff] %v742_v52 }
 0x3f4   :  { %799 = vst [vmem:[#allocation10 + $0x20] sm:$0xff] %v737_v54  ;;  %v1172_v55 = vpop.f32.mrb[22].mxu1 }
 0x3f5   :  { %v752_v56 = vadd.f32 %v1172_v55, %v832_v0  ;;  %v746_v57 = vpop.f32.mrb[23].mxu1 }
 0x3f6   :  { %v747_v58 = vadd.f32 %v832_v0, %v746_v57 }
 0x3f7   :  { %802 = vst [vmem:[#allocation10 + $0x38] sm:$0xff] %v752_v56 }
 0x3f8   :  { %801 = vst [vmem:[#allocation10 + $0x30] sm:$0xff] %v747_v58  ;;  %v1175_v59 = vpop.f32.mrb[24].mxu1 }
 0x3f9   :  { %v762_v60 = vadd.f32 %v1175_v59, %v832_v0  ;;  %v756_v61 = vpop.f32.mrb[25].mxu1 }
 0x3fa   :  { %v757_v62 = vadd.f32 %v832_v0, %v756_v61 }
 0x3fb   :  { %804 = vst [vmem:[#allocation10 + $0x48] sm:$0xff] %v762_v60 }
 0x3fc   :  { %803 = vst [vmem:[#allocation10 + $0x40] sm:$0xff] %v757_v62  ;;  %v1178_v63 = vpop.f32.mrb[26].mxu1 }
 0x3fd   :  { %v772_v1 = vadd.f32 %v1178_v63, %v832_v0  ;;  %v766_v2 = vpop.f32.mrb[27].mxu1 }
 0x3fe   :  { %v767_v3 = vadd.f32 %v832_v0, %v766_v2 }
 0x3ff   :  { %806 = vst [vmem:[#allocation10 + $0x58] sm:$0xff] %v772_v1 }
 0x400   :  { %805 = vst [vmem:[#allocation10 + $0x50] sm:$0xff] %v767_v3  ;;  %v1181_v4 = vpop.f32.mrb[28].mxu1 }
 0x401   :  { %v782_v5 = vadd.f32 %v1181_v4, %v832_v0  ;;  %v776_v6 = vpop.f32.mrb[29].mxu1 }
 0x402   :  { %v777_v7 = vadd.f32 %v832_v0, %v776_v6 }
 0x403   :  { %808 = vst [vmem:[#allocation10 + $0x68] sm:$0xff] %v782_v5 }
 0x404   :  { %807 = vst [vmem:[#allocation10 + $0x60] sm:$0xff] %v777_v7  ;;  %v1184_v8 = vpop.f32.mrb[30].mxu1 }
 0x405   :  { %v792_v9 = vadd.f32 %v1184_v8, %v832_v0  ;;  %v786_v10 = vpop.f32.mrb[31].mxu1 }
 0x406   :  { %v787_v11 = vadd.f32 %v832_v0, %v786_v10 }
 0x407   :  { %810 = vst [vmem:[#allocation10 + $0x78] sm:$0xff] %v792_v9 }
 0x408   :  { %809 = vst [vmem:[#allocation10 + $0x70] sm:$0xff] %v787_v11 }
 0x409   :  { %1515 = shalt.err (!%p1512_p8)
}
 0x40a   :  { %s1516_s11 = scalar_lea.hbm %s1738_s7, 2048 }
 0x40b   :  { %p1517_p9 = scmp.ne.s32.totalorder %s1738_s7, %s1516_s11  ;;  %p1520_p10 = scmp.lt.u32.totalorder %s1516_s11, %s1738_s7 }
 0x40d   :  { %p1522_p11 = pnand %p1520_p10, %p1517_p9 }
 0x40f   :  { %1525 = shalt.err (!%p1522_p11)
}
 0x410   :  { %822 = dma.vmem_to_hbm [thread:$0]  %s817_s30, 2048, %s1738_s7, [#allocation4], %s1536_s13, %s1536_s13, %s1537_s14  }
 0x411   :  { %1532 = dma.done.wait [#allocation4], 2048  }
 0x412   :  { %1533 = vsyncadd [#allocation4], 4294965248 }
 0x413   :  { %826 = vsyncpa [#allocation3], 1 }
 0x414   :  { %827 = vsyncpa [#allocation6], 1 }
 0x415   :  { %828 = vsyncpa [#allocation9], 1 }
 0x416   :  { %829 = vsyncpa [#allocation4], 1 }

</bundles_post_ra>
